<compile_context>
chip_gen: v5e
topology: v5e:2x2
jax: 0.10.0
libtpu: 0.0.40
codegen_flags: <defaults>
</compile_context>

<pallas_src>
import functools

import numpy as np
import jax
import jax.numpy as jnp
from jax.experimental import pallas as pl
from jax.experimental.pallas import tpu as pltpu


def mlp_kernel(x_ref, w1_ref, b1_ref, w2_ref, b2_ref, o_ref):
    """One batch tile of: relu(x @ W1 + b1) @ W2 + b2 (Dropout = identity)."""
    x = x_ref[...]
    w1 = w1_ref[...]
    # First matmul on the MXU, f32 accumulation regardless of input dtype.
    h = jnp.dot(x.astype(w1.dtype), w1, preferred_element_type=jnp.float32)
    h = h + b1_ref[...]            # bias in f32 (VPU-friendly on all gens incl. v5e)
    h = jnp.maximum(h, 0.0)        # ReLU in f32
    # TODO(synk): training-mode Dropout(0.2) via pltpu.prng_random_bits mask not
    # implemented (inference semantics: identity).
    w2 = w2_ref[...]
    y = jnp.dot(h.astype(w2.dtype), w2, preferred_element_type=jnp.float32)
    y = y + b2_ref[...]
    o_ref[...] = y.astype(o_ref.dtype)


def _round_up(x, m):
    return ((x + m - 1) // m) * m


def _tensorcores_per_chip():
    """Best-effort: 2 TensorCores on v7x, 1 on v5e/v6e."""
    try:
        kind = jax.devices()[0].device_kind.lower()
    except Exception:
        return 1
    if "v7" in kind or "7x" in kind:
        return 2
    return 1


def _auto_block_m(batch, max_block_m=1024):
    """Cover the batch with the fewest grid steps; on v7x keep >= 2 steps so both
    TensorCores get work via dimension_semantics=('parallel',)."""
    n_tc = _tensorcores_per_chip()
    b8 = _round_up(max(batch, 1), 8)
    bm = _round_up(pl.cdiv(b8, n_tc), 8)
    return max(8, min(bm, max_block_m))


def prepare_params(w1, b1, w2, b2, compute_dtype=jnp.float32):
    """One-time parameter prep (hoisted out of the per-call forward path).

    Weights are stored transposed vs PyTorch ([in, out]); they are cast to the
    MXU compute dtype once here; biases are kept f32 with shape (1, dim).
    """
    compute_dtype = jnp.dtype(compute_dtype)
    w1 = jnp.asarray(w1, compute_dtype)
    w2 = jnp.asarray(w2, compute_dtype)
    b1 = jnp.asarray(b1, jnp.float32).reshape(1, -1)
    b2 = jnp.asarray(b2, jnp.float32).reshape(1, -1)
    return w1, b1, w2, b2


@functools.partial(jax.jit, static_argnames=("block_m", "out_dtype"))
def _forward(x, w1, b1, w2, b2, *, block_m, out_dtype):
    B, input_dim = x.shape
    in_dim, hidden_dim = w1.shape
    assert in_dim == input_dim
    hid2, output_dim = w2.shape
    assert hid2 == hidden_dim

    bm = min(block_m, _round_up(B, 8))
    bm = _round_up(bm, 8)
    B_p = _round_up(B, bm)

    # Only the batch is padded (to a tile multiple); feature dims stay unpadded
    # (full-extent blocks), so no lane-padding XLA ops and no inflated HBM traffic.
    if B_p != B:
        x_in = jnp.zeros((B_p, input_dim), x.dtype).at[:B, :].set(x)
    else:
        x_in = x

    grid = (B_p // bm,)

    act_bytes = jnp.dtype(x.dtype).itemsize
    w_bytes = jnp.dtype(w1.dtype).itemsize
    out_bytes = jnp.dtype(out_dtype).itemsize

    # VMEM budget: double-buffered x/out tiles, resident weights/biases (implicit
    # 2 buffers each), the f32 hidden intermediate + cast copy, with 2x headroom
    # for Mosaic internal scratch.  Capped at 48 MiB -- well under v7x's 64 MiB.
    vmem_needed = (
        2 * bm * input_dim * act_bytes
        + 2 * bm * output_dim * out_bytes
        + 2 * (input_dim * hidden_dim + hidden_dim * output_dim) * w_bytes
        + 2 * (hidden_dim + output_dim) * 4
        + bm * hidden_dim * 4            # f32 hidden activations
        + bm * input_dim * 4             # in-kernel cast copy of x (worst case)
    )
    vmem_limit = int(min(max(2 * vmem_needed, 16 * 1024 * 1024), 48 * 1024 * 1024))

    flops = 2 * B_p * (input_dim * hidden_dim + hidden_dim * output_dim)
    bytes_accessed = (
        B_p * input_dim * act_bytes
        + (input_dim * hidden_dim + hidden_dim * output_dim) * w_bytes
        + (hidden_dim + output_dim) * 4
        + B_p * output_dim * out_bytes
    )

    out = pl.pallas_call(
        mlp_kernel,
        out_shape=jax.ShapeDtypeStruct((B_p, output_dim), out_dtype),
        grid_spec=pltpu.PrefetchScalarGridSpec(
            num_scalar_prefetch=0,
            grid=grid,
            in_specs=[
                pl.BlockSpec((bm, input_dim), lambda i: (i, 0)),          # x tile
                pl.BlockSpec((input_dim, hidden_dim), lambda i: (0, 0)),  # W1 (resident)
                pl.BlockSpec((1, hidden_dim), lambda i: (0, 0)),          # b1
                pl.BlockSpec((hidden_dim, output_dim), lambda i: (0, 0)), # W2 (resident)
                pl.BlockSpec((1, output_dim), lambda i: (0, 0)),          # b2
            ],
            out_specs=pl.BlockSpec((bm, output_dim), lambda i: (i, 0)),
        ),
        compiler_params=pltpu.CompilerParams(
            dimension_semantics=("parallel",),   # batch tiles shard across TCs on v7x
            vmem_limit_bytes=vmem_limit,
        ),
        cost_estimate=pl.CostEstimate(
            flops=flops, transcendentals=0, bytes_accessed=bytes_accessed),
    )(x_in, w1, b1, w2, b2)

    if B_p != B:
        out = out[:B]
    return out


def simple_net_forward(x, params, *, block_m=None, out_dtype=None):
    """y = relu(x @ W1 + b1) @ W2 + b2 ; Dropout(0.2) is identity at inference.

    `params` must come from `prepare_params` (weights already in compute dtype).
    Pass bf16 `x` on v6e/v7x to halve activation DMA; accumulation stays f32.
    """
    w1, b1, w2, b2 = params
    if block_m is None:
        block_m = _auto_block_m(x.shape[0])
    if out_dtype is None:
        out_dtype = x.dtype
    return _forward(x, w1, b1, w2, b2, block_m=int(block_m),
                    out_dtype=jnp.dtype(out_dtype))


def init_params(key, input_dim, hidden_dim, output_dim, dtype=jnp.float32):
    """PyTorch nn.Linear default init: U(-1/sqrt(fan_in), 1/sqrt(fan_in)).
    Weights stored transposed relative to PyTorch ([in, out])."""
    k1, k2, k3, k4 = jax.random.split(key, 4)
    bound1 = 1.0 / np.sqrt(input_dim)
    bound2 = 1.0 / np.sqrt(hidden_dim)
    w1 = jax.random.uniform(k1, (input_dim, hidden_dim), dtype, -bound1, bound1)
    b1 = jax.random.uniform(k2, (1, hidden_dim), dtype, -bound1, bound1)
    w2 = jax.random.uniform(k3, (hidden_dim, output_dim), dtype, -bound2, bound2)
    b2 = jax.random.uniform(k4, (1, output_dim), dtype, -bound2, bound2)
    return w1, b1, w2, b2


if __name__ == "__main__":
    batch = 512            # 1 grid step on v5e/v6e; 2 steps (one per TC) on v7x
    input_dim = 32
    hidden_dim = 64
    output_dim = 16

    key = jax.random.PRNGKey(0)
    kx, kp = jax.random.split(key)
    x = jax.random.normal(kx, (batch, input_dim), dtype=jnp.float32)
    w1, b1, w2, b2 = init_params(kp, input_dim, hidden_dim, output_dim)

    # float64 numpy ground truth (independent of MXU precision/pass count).
    xn = np.asarray(x, np.float64)
    w1n, b1n = np.asarray(w1, np.float64), np.asarray(b1, np.float64)
    w2n, b2n = np.asarray(w2, np.float64), np.asarray(b2, np.float64)
    ref64 = np.maximum(xn @ w1n + b1n, 0.0) @ w2n + b2n

    # --- f32 path ------------------------------------------------------------
    params_f32 = prepare_params(w1, b1, w2, b2, compute_dtype=jnp.float32)
    out = simple_net_forward(x, params_f32)
    jax.block_until_ready(out)
    assert out.shape == (batch, output_dim)
    assert np.allclose(np.asarray(out, np.float64), ref64, atol=1e-2, rtol=1e-2)

    # --- bf16 MXU path: bf16 weights AND bf16 activations (halved DMA on
    #     v6e/v7x), f32 accumulation / bias / ReLU, f32 output. --------------
    params_bf16 = prepare_params(w1, b1, w2, b2, compute_dtype=jnp.bfloat16)
    x_bf16 = x.astype(jnp.bfloat16)
    out_bf16 = simple_net_forward(x_bf16, params_bf16, out_dtype=jnp.float32)
    jax.block_until_ready(out_bf16)
    assert out_bf16.shape == (batch, output_dim)
    # Matching bf16-quantized reference (f32 accumulation).
    h_ref = jnp.maximum(
        jnp.dot(x_bf16, w1.astype(jnp.bfloat16),
                preferred_element_type=jnp.float32) + b1, 0.0)
    ref_bf16 = jnp.dot(h_ref.astype(jnp.bfloat16), w2.astype(jnp.bfloat16),
                       preferred_element_type=jnp.float32) + b2
    assert np.allclose(np.asarray(out_bf16), np.asarray(ref_bf16),
                       atol=2e-2, rtol=2e-2)

    print("KERNEL_OK")
</pallas_src>

<mosaic_0001>
module attributes {stable_mosaic.version = 11 : i64} {
  func.func @mlp_kernel(%arg0: i32, %arg1: memref<512x32xf32, #tpu.memory_space<vmem>>, %arg2: memref<32x64xf32, #tpu.memory_space<vmem>>, %arg3: memref<1x64xf32, #tpu.memory_space<vmem>>, %arg4: memref<64x16xf32, #tpu.memory_space<vmem>>, %arg5: memref<1x16xf32, #tpu.memory_space<vmem>>, %arg6: memref<512x16xf32, #tpu.memory_space<vmem>>) attributes {dimension_semantics = [#tpu.dimension_semantics<parallel>], iteration_bounds = array<i64: 1>, scalar_prefetch = 0 : i64, scratch_operands = 0 : i64, tpu.core_type = #tpu.core_type<tc>, window_params = [{transform_indices = @transform_0, window_bounds = array<i64: 512, 32>}, {pipeline_mode = #tpu.pipeline_mode<synchronous>, transform_indices = @transform_1, window_bounds = array<i64: 32, 64>}, {pipeline_mode = #tpu.pipeline_mode<synchronous>, transform_indices = @transform_2, window_bounds = array<i64: 1, 64>}, {pipeline_mode = #tpu.pipeline_mode<synchronous>, transform_indices = @transform_3, window_bounds = array<i64: 64, 16>}, {pipeline_mode = #tpu.pipeline_mode<synchronous>, transform_indices = @transform_4, window_bounds = array<i64: 1, 16>}, {transform_indices = @transform_5, window_bounds = array<i64: 512, 16>}]} {
    %c0 = arith.constant 0 : index
    %c0_0 = arith.constant 0 : index
    %0 = vector.load %arg1[%c0, %c0_0] : memref<512x32xf32, #tpu.memory_space<vmem>>, vector<512x32xf32>
    %c0_1 = arith.constant 0 : index
    %c0_2 = arith.constant 0 : index
    %1 = vector.load %arg2[%c0_1, %c0_2] : memref<32x64xf32, #tpu.memory_space<vmem>>, vector<32x64xf32>
    %cst = arith.constant dense<0.000000e+00> : vector<512x64xf32>
    %2 = tpu.matmul %0, %1, %cst {dimension_numbers = #tpu.dot_dimension_numbers<[1], [0], [0], [1], [0, 0, 1, 1], [], []>} : vector<512x32xf32>, vector<32x64xf32>, vector<512x64xf32> -> vector<512x64xf32>
    %c0_3 = arith.constant 0 : index
    %c0_4 = arith.constant 0 : index
    %3 = vector.load %arg3[%c0_3, %c0_4] : memref<1x64xf32, #tpu.memory_space<vmem>>, vector<1x64xf32>
    %4 = vector.broadcast %3 : vector<1x64xf32> to vector<512x64xf32>
    %5 = arith.addf %2, %4 : vector<512x64xf32>
    %cst_5 = arith.constant 0.000000e+00 : f32
    %6 = vector.broadcast %cst_5 : f32 to vector<512x64xf32>
    %7 = arith.maximumf %5, %6 : vector<512x64xf32>
    %c0_6 = arith.constant 0 : index
    %c0_7 = arith.constant 0 : index
    %8 = vector.load %arg4[%c0_6, %c0_7] : memref<64x16xf32, #tpu.memory_space<vmem>>, vector<64x16xf32>
    %cst_8 = arith.constant dense<0.000000e+00> : vector<512x16xf32>
    %9 = tpu.matmul %7, %8, %cst_8 {dimension_numbers = #tpu.dot_dimension_numbers<[1], [0], [0], [1], [0, 0, 1, 1], [], []>} : vector<512x64xf32>, vector<64x16xf32>, vector<512x16xf32> -> vector<512x16xf32>
    %c0_9 = arith.constant 0 : index
    %c0_10 = arith.constant 0 : index
    %10 = vector.load %arg5[%c0_9, %c0_10] : memref<1x16xf32, #tpu.memory_space<vmem>>, vector<1x16xf32>
    %11 = vector.broadcast %10 : vector<1x16xf32> to vector<512x16xf32>
    %12 = arith.addf %9, %11 : vector<512x16xf32>
    %c0_11 = arith.constant 0 : index
    %c0_12 = arith.constant 0 : index
    %13 = vector.load %arg6[%c0_11, %c0_12] : memref<512x16xf32, #tpu.memory_space<vmem>>, vector<512x16xf32>
    tpu.vector_store %arg6[%c0_11, %c0_12], %12 {strides = array<i32>} : memref<512x16xf32, #tpu.memory_space<vmem>>, vector<512x16xf32>,
    return
  }
  func.func @transform_0(%arg0: i32) -> (i32, i32) {
    %c0_i32 = arith.constant 0 : i32
    %c0_i32_0 = arith.constant 0 : i32
    return %arg0, %c0_i32 : i32, i32
  }
  func.func @transform_1(%arg0: i32) -> (i32, i32) {
    %c0_i32 = arith.constant 0 : i32
    %c0_i32_0 = arith.constant 0 : i32
    %c0_i32_1 = arith.constant 0 : i32
    return %c0_i32, %c0_i32_0 : i32, i32
  }
  func.func @transform_2(%arg0: i32) -> (i32, i32) {
    %c0_i32 = arith.constant 0 : i32
    %c0_i32_0 = arith.constant 0 : i32
    %c0_i32_1 = arith.constant 0 : i32
    return %c0_i32, %c0_i32_0 : i32, i32
  }
  func.func @transform_3(%arg0: i32) -> (i32, i32) {
    %c0_i32 = arith.constant 0 : i32
    %c0_i32_0 = arith.constant 0 : i32
    %c0_i32_1 = arith.constant 0 : i32
    return %c0_i32, %c0_i32_0 : i32, i32
  }
  func.func @transform_4(%arg0: i32) -> (i32, i32) {
    %c0_i32 = arith.constant 0 : i32
    %c0_i32_0 = arith.constant 0 : i32
    %c0_i32_1 = arith.constant 0 : i32
    return %c0_i32, %c0_i32_0 : i32, i32
  }
  func.func @transform_5(%arg0: i32) -> (i32, i32) {
    %c0_i32 = arith.constant 0 : i32
    %c0_i32_0 = arith.constant 0 : i32
    return %arg0, %c0_i32 : i32, i32
  }
}

</mosaic_0001>

<bundles_post_ra>
// kernel: _forward.1
= control target key start
LH: loop header
LB: loop body
LE: loop exit
PB: predicated region body
PF: predicated region fallthrough
CT: control target
= control target key end

     0   :  { %vm92_vm0 = vcmask 261120   ;;  %vm570_vm1 = vcmask 523264   ;;  %vm972_vm2 = vcmask 130048   ;;  %s1963_s1 = inlined_call_operand.vmem [shape: f32[32,64], index: 1, kind: input, shape index: {}]   ;;  %s1964_s0 = inlined_call_operand.vmem [shape: f32[512,32], index: 0, kind: input, shape index: {}]   ;;  %s1965_s2 = inlined_call_operand.vmem [shape: f32[1,64], index: 2, kind: input, shape index: {}]   ;;  %s1966_s3 = inlined_call_operand.vmem [shape: f32[64,16], index: 3, kind: input, shape index: {}]   ;;  %s1967_s4 = inlined_call_operand.vmem [shape: f32[1,16], index: 4, kind: input, shape index: {}]   ;;  %s1968_s5 = inlined_call_operand.vmem [shape: f32[512,16], index: 5, kind: output, shape index: {}]  }
   0x1   :  { %v87_v0 = vld [vmem:[%s1963_s1 + $0x18] sm:$0xff]  ;;  %v86_v1 = vld [vmem:[%s1963_s1 + $0x10] sm:$0xff]  ;;  %v85_v2 = vld [vmem:[%s1963_s1 + $0x8] sm:$0xff] }
   0x2   :  { %297 = vmatpush.msra.mxu0 %v87_v0  ;;  %1169 = vmatpush.msra.mxu3 %v87_v0  ;;  %v84_v3 = vld [vmem:[%s1963_s1] sm:$0xff]  ;;  %v21_v5 = vld [vmem:[%s1964_s0 + $0x8] sm:$0xff]  ;;  %v22_v6 = vld [vmem:[%s1964_s0 + $0x10] sm:$0xff] }
   0x3   :  { %v20_v4 = vld [vmem:[%s1964_s0] sm:$0xff]  ;;  %v23_v7 = vld [vmem:[%s1964_s0 + $0x18] sm:$0xff]  ;;  %v25_v9 = vld [vmem:[%s1964_s0 + $0x28] sm:$0xff] }
   0x4   :  { %298 = vmatpush.msra.mxu0 %v86_v1  ;;  %1170 = vmatpush.msra.mxu3 %v86_v1  ;;  %v24_v8 = vld [vmem:[%s1964_s0 + $0x20] sm:$0xff]  ;;  %v26_v10 = vld [vmem:[%s1964_s0 + $0x30] sm:$0xff]  ;;  %v27_v11 = vld [vmem:[%s1964_s0 + $0x38] sm:$0xff] }
   0x5   :  { %v28_v12 = vld [vmem:[%s1964_s0 + $0x40] sm:$0xff]  ;;  %v29_v13 = vld [vmem:[%s1964_s0 + $0x48] sm:$0xff]  ;;  %v30_v14 = vld [vmem:[%s1964_s0 + $0x50] sm:$0xff] }
   0x6   :  { %299 = vmatpush.msra.mxu0 %v85_v2  ;;  %1171 = vmatpush.msra.mxu3 %v85_v2  ;;  %v565_v15 = vld [vmem:[%s1966_s3 + $0x38] sm:$0xff]  ;;  %v564_v16 = vld [vmem:[%s1966_s3 + $0x30] sm:$0xff]  ;;  %v563_v17 = vld [vmem:[%s1966_s3 + $0x28] sm:$0xff] }
   0x7   :  { %771 = vmatpush.msra.mxu1 %v565_v15  ;;  %1173 = vmatpush.msra.mxu2 %v565_v15  ;;  %v31_v18 = vld [vmem:[%s1964_s0 + $0x58] sm:$0xff]  ;;  %v562_v19 = vld [vmem:[%s1966_s3 + $0x20] sm:$0xff]  ;;  %v560_v21 = vld [vmem:[%s1966_s3 + $0x10] sm:$0xff] }
   0x8   :  { %300 = vmatpush.msra.mxu0 %v84_v3  ;;  %1172 = vmatpush.msra.mxu3 %v84_v3  ;;  %v561_v20 = vld [vmem:[%s1966_s3 + $0x18] sm:$0xff]  ;;  %v32_v22 = vld [vmem:[%s1964_s0 + $0x60] sm:$0xff]  ;;  %v559_v23 = vld [vmem:[%s1966_s3 + $0x8] sm:$0xff] }
   0x9   :  { %1041 = vmatmul.msk.f32.vlgmr.msra.gmra.mxu0 %vm92_vm0, %v20_v4  ;;  %772 = vmatpush.msra.mxu1 %v564_v16  ;;  %v558_v24 = vld [vmem:[%s1966_s3] sm:$0xff]  ;;  %v33_v25 = vld [vmem:[%s1964_s0 + $0x68] sm:$0xff]  ;;  %v34_v26 = vld [vmem:[%s1964_s0 + $0x70] sm:$0xff] }
   0xa   :  { %1174 = vmatpush.msra.mxu2 %v564_v16  ;;  %v35_v27 = vld [vmem:[%s1964_s0 + $0x78] sm:$0xff]  ;;  %v1316_v28 = vld [vmem:[%s1965_s2] ss:$0 sm:$0xff]  ;;  %v37_v34 = vld [vmem:[%s1964_s0 + $0x88] sm:$0xff] }
   0xb   :  { %773 = vmatpush.msra.mxu1 %v563_v17  ;;  %v36_v30 = vld [vmem:[%s1964_s0 + $0x80] sm:$0xff]  ;;  %v38_v38 = vld [vmem:[%s1964_s0 + $0x90] sm:$0xff]  ;;  %v39_v42 = vld [vmem:[%s1964_s0 + $0x98] sm:$0xff] }
   0xc   :  { %1175 = vmatpush.msra.mxu2 %v563_v17  ;;  %v40_v46 = vld [vmem:[%s1964_s0 + $0xa0] sm:$0xff]  ;;  %v41_v50 = vld [vmem:[%s1964_s0 + $0xa8] sm:$0xff]  ;;  %v42_v54 = vld [vmem:[%s1964_s0 + $0xb0] sm:$0xff] }
   0xd   :  { %774 = vmatpush.msra.mxu1 %v562_v19  ;;  %v43_v58 = vld [vmem:[%s1964_s0 + $0xb8] sm:$0xff]  ;;  %v44_v62 = vld [vmem:[%s1964_s0 + $0xc0] sm:$0xff]  ;;  %v45_v2 = vld [vmem:[%s1964_s0 + $0xc8] sm:$0xff] }
   0xe   :  { %1176 = vmatpush.msra.mxu2 %v562_v19  ;;  %v53_v17 = vld [vmem:[%s1964_s0 + $0x108] sm:$0xff] }
   0xf   :  { %775 = vmatpush.msra.mxu1 %v561_v20  ;;  %1074 = vmatmul.msk.f32.vlgmr.msra.gmra.mxu3 %vm92_vm0, %v53_v17  ;;  %v49_v19 = vld [vmem:[%s1964_s0 + $0xe8] sm:$0xff] }
  0x10   :  { %1177 = vmatpush.msra.mxu2 %v561_v20 }
  0x11   :  { %1042 = vmatmul.msk.f32.gmra.mxu0 %vm92_vm0, %v21_v5  ;;  %776 = vmatpush.msra.mxu1 %v560_v21 }
  0x12   :  { %1178 = vmatpush.msra.mxu2 %v560_v21 }
  0x13   :  { %777 = vmatpush.msra.mxu1 %v559_v23 }
  0x14   :  { %1179 = vmatpush.msra.mxu2 %v559_v23 }
  0x15   :  { %778 = vmatpush.msra.mxu1 %v558_v24 }
  0x16   :  { %1180 = vmatpush.msra.mxu2 %v558_v24  ;;  %v50_v24 = vld [vmem:[%s1964_s0 + $0xf0] sm:$0xff] }
  0x19   :  { %1043 = vmatmul.msk.f32.gmra.mxu0 %vm92_vm0, %v22_v6  ;;  %v46_v6 = vld [vmem:[%s1964_s0 + $0xd0] sm:$0xff] }
  0x21   :  { %1044 = vmatmul.msk.f32.gmra.mxu0 %vm92_vm0, %v23_v7 }
  0x29   :  { %1045 = vmatmul.msk.f32.gmra.mxu0 %vm92_vm0, %v24_v8 }
  0x31   :  { %1046 = vmatmul.msk.f32.gmra.mxu0 %vm92_vm0, %v25_v9 }
  0x39   :  { %1047 = vmatmul.msk.f32.gmra.mxu0 %vm92_vm0, %v26_v10  ;;  %v47_v10 = vld [vmem:[%s1964_s0 + $0xd8] sm:$0xff] }
  0x41   :  { %1048 = vmatmul.msk.f32.gmra.mxu0 %vm92_vm0, %v27_v11 }
  0x49   :  { %1049 = vmatmul.msk.f32.gmra.mxu0 %vm92_vm0, %v28_v12 }
  0x51   :  { %1050 = vmatmul.msk.f32.gmra.mxu0 %vm92_vm0, %v29_v13 }
  0x59   :  { %1051 = vmatmul.msk.f32.gmra.mxu0 %vm92_vm0, %v30_v14  ;;  %v48_v14 = vld [vmem:[%s1964_s0 + $0xe0] sm:$0xff] }
  0x61   :  { %1052 = vmatmul.msk.f32.gmra.mxu0 %vm92_vm0, %v31_v18 }
  0x69   :  { %1053 = vmatmul.msk.f32.gmra.mxu0 %vm92_vm0, %v32_v22  ;;  %v54_v22 = vld [vmem:[%s1964_s0 + $0x110] sm:$0xff] }
  0x6a   :  { %1075 = vmatmul.msk.f32.gmra.mxu3 %vm92_vm0, %v54_v22 }
  0x71   :  { %1054 = vmatmul.msk.f32.gmra.mxu0 %vm92_vm0, %v33_v25 }
  0x79   :  { %1055 = vmatmul.msk.f32.gmra.mxu0 %vm92_vm0, %v34_v26 }
  0x81   :  { %1056 = vmatmul.msk.f32.gmra.mxu0 %vm92_vm0, %v35_v27  ;;  %v55_v27 = vld [vmem:[%s1964_s0 + $0x118] sm:$0xff] }
  0x82   :  { %1076 = vmatmul.msk.f32.gmra.mxu3 %vm92_vm0, %v55_v27 }
  0x86   :  { %v302_v29 = vpop.f32.mrf.mxu0 }
  0x87   :  { %v303_v31 = vadd.f32 %v1316_v28, %v302_v29 }
  0x89   :  { %v494_v32 = vmax.f32 %v303_v31, 0.0  ;;  %1057 = vmatmul.msk.f32.gmra.mxu0 %vm92_vm0, %v36_v30  ;;  %v51_v30 = vld [vmem:[%s1964_s0 + $0xf8] sm:$0xff] }
  0x8b   :  { %1105 = vmatmul.msk.f32.vlgmr.msra.gmra.mxu1 %vm570_vm1, %v494_v32 }
  0x8e   :  { %v305_v33 = vpop.f32.mrf.mxu0 }
  0x8f   :  { %v306_v35 = vadd.f32 %v1316_v28, %v305_v33  ;;  %v56_v33 = vld [vmem:[%s1964_s0 + $0x120] sm:$0xff] }
  0x90   :  { %1077 = vmatmul.msk.f32.gmra.mxu3 %vm92_vm0, %v56_v33 }
  0x91   :  { %v495_v36 = vmax.f32 %v306_v35, 0.0  ;;  %1058 = vmatmul.msk.f32.gmra.mxu0 %vm92_vm0, %v37_v34  ;;  %v1433_v34 = vld [vmem:[%s1967_s4] ss:$0 sm:$0xff] }
  0x93   :  { %1106 = vmatmul.msk.f32.gmra.mxu1 %vm570_vm1, %v495_v36  ;;  %v52_v36 = vld [vmem:[%s1964_s0 + $0x100] sm:$0xff] }
  0x96   :  { %v308_v37 = vpop.f32.mrf.mxu0 }
  0x97   :  { %v309_v39 = vadd.f32 %v1316_v28, %v308_v37 }
  0x99   :  { %v496_v40 = vmax.f32 %v309_v39, 0.0  ;;  %1059 = vmatmul.msk.f32.gmra.mxu0 %vm92_vm0, %v38_v38 }
  0x9b   :  { %1107 = vmatmul.msk.f32.gmra.mxu1 %vm570_vm1, %v496_v40 }
  0x9e   :  { %v311_v41 = vpop.f32.mrf.mxu0 }
  0x9f   :  { %v312_v43 = vadd.f32 %v1316_v28, %v311_v41  ;;  %v57_v41 = vld [vmem:[%s1964_s0 + $0x128] sm:$0xff] }
  0xa0   :  { %1078 = vmatmul.msk.f32.gmra.mxu3 %vm92_vm0, %v57_v41 }
  0xa1   :  { %v497_v44 = vmax.f32 %v312_v43, 0.0  ;;  %1060 = vmatmul.msk.f32.gmra.mxu0 %vm92_vm0, %v39_v42 }
  0xa3   :  { %1108 = vmatmul.msk.f32.gmra.mxu1 %vm570_vm1, %v497_v44 }
  0xa6   :  { %v314_v45 = vpop.f32.mrf.mxu0 }
  0xa7   :  { %v315_v47 = vadd.f32 %v1316_v28, %v314_v45 }
  0xa9   :  { %v498_v48 = vmax.f32 %v315_v47, 0.0  ;;  %1061 = vmatmul.msk.f32.gmra.mxu0 %vm92_vm0, %v40_v46  ;;  %v58_v47 = vld [vmem:[%s1964_s0 + $0x130] sm:$0xff] }
  0xaa   :  { %1079 = vmatmul.msk.f32.gmra.mxu3 %vm92_vm0, %v58_v47 }
  0xab   :  { %1109 = vmatmul.msk.f32.gmra.mxu1 %vm570_vm1, %v498_v48 }
  0xae   :  { %v317_v49 = vpop.f32.mrf.mxu0 }
  0xaf   :  { %v318_v51 = vadd.f32 %v1316_v28, %v317_v49 }
  0xb1   :  { %v499_v52 = vmax.f32 %v318_v51, 0.0  ;;  %1062 = vmatmul.msk.f32.gmra.mxu0 %vm92_vm0, %v41_v50 }
  0xb3   :  { %1110 = vmatmul.msk.f32.gmra.mxu1 %vm570_vm1, %v499_v52 }
  0xb6   :  { %v320_v53 = vpop.f32.mrf.mxu0 }
  0xb7   :  { %v321_v55 = vadd.f32 %v1316_v28, %v320_v53  ;;  %v59_v53 = vld [vmem:[%s1964_s0 + $0x138] sm:$0xff] }
  0xb8   :  { %1080 = vmatmul.msk.f32.gmra.mxu3 %vm92_vm0, %v59_v53  ;;  %v401_v53 = vpop.f32.mrf.mxu3 }
  0xb9   :  { %v500_v56 = vmax.f32 %v321_v55, 0.0  ;;  %1063 = vmatmul.msk.f32.gmra.mxu0 %vm92_vm0, %v42_v54 }
  0xbb   :  { %1111 = vmatmul.msk.f32.gmra.mxu1 %vm570_vm1, %v500_v56 }
  0xbe   :  { %v323_v57 = vpop.f32.mrf.mxu0 }
  0xbf   :  { %v324_v59 = vadd.f32 %v1316_v28, %v323_v57 }
  0xc1   :  { %v501_v60 = vmax.f32 %v324_v59, 0.0  ;;  %1064 = vmatmul.msk.f32.gmra.mxu0 %vm92_vm0, %v43_v58  ;;  %v60_v59 = vld [vmem:[%s1964_s0 + $0x140] sm:$0xff] }
  0xc2   :  { %1081 = vmatmul.msk.f32.gmra.mxu3 %vm92_vm0, %v60_v59 }
  0xc3   :  { %1112 = vmatmul.msk.f32.gmra.mxu1 %vm570_vm1, %v501_v60 }
  0xc6   :  { %v326_v61 = vpop.f32.mrf.mxu0 }
  0xc7   :  { %v327_v63 = vadd.f32 %v1316_v28, %v326_v61 }
  0xc9   :  { %v502_v0 = vmax.f32 %v327_v63, 0.0  ;;  %1065 = vmatmul.msk.f32.gmra.mxu0 %vm92_vm0, %v44_v62 }
  0xcb   :  { %1113 = vmatmul.msk.f32.gmra.mxu1 %vm570_vm1, %v502_v0 }
  0xce   :  { %v329_v1 = vpop.f32.mrf.mxu0 }
  0xcf   :  { %v330_v3 = vadd.f32 %v1316_v28, %v329_v1  ;;  %v61_v1 = vld [vmem:[%s1964_s0 + $0x148] sm:$0xff] }
  0xd0   :  { %1082 = vmatmul.msk.f32.gmra.mxu3 %vm92_vm0, %v61_v1  ;;  %v71_v1 = vld [vmem:[%s1964_s0 + $0x198] sm:$0xff] }
  0xd1   :  { %v503_v4 = vmax.f32 %v330_v3, 0.0  ;;  %1066 = vmatmul.msk.f32.gmra.mxu0 %vm92_vm0, %v45_v2 }
  0xd3   :  { %1114 = vmatmul.msk.f32.gmra.mxu1 %vm570_vm1, %v503_v4 }
  0xd6   :  { %v332_v5 = vpop.f32.mrf.mxu0 }
  0xd7   :  { %v333_v7 = vadd.f32 %v1316_v28, %v332_v5 }
  0xd9   :  { %v504_v8 = vmax.f32 %v333_v7, 0.0  ;;  %1067 = vmatmul.msk.f32.gmra.mxu0 %vm92_vm0, %v46_v6  ;;  %v62_v7 = vld [vmem:[%s1964_s0 + $0x150] sm:$0xff] }
  0xda   :  { %1083 = vmatmul.msk.f32.gmra.mxu3 %vm92_vm0, %v62_v7 }
  0xdb   :  { %1115 = vmatmul.msk.f32.gmra.mxu1 %vm570_vm1, %v504_v8 }
  0xde   :  { %v335_v9 = vpop.f32.mrf.mxu0 }
  0xdf   :  { %v336_v11 = vadd.f32 %v1316_v28, %v335_v9 }
  0xe1   :  { %v505_v12 = vmax.f32 %v336_v11, 0.0  ;;  %1068 = vmatmul.msk.f32.gmra.mxu0 %vm92_vm0, %v47_v10 }
  0xe3   :  { %1116 = vmatmul.msk.f32.gmra.mxu1 %vm570_vm1, %v505_v12 }
  0xe6   :  { %v338_v13 = vpop.f32.mrf.mxu0 }
  0xe7   :  { %v339_v15 = vadd.f32 %v1316_v28, %v338_v13  ;;  %v63_v13 = vld [vmem:[%s1964_s0 + $0x158] sm:$0xff] }
  0xe8   :  { %1084 = vmatmul.msk.f32.gmra.mxu3 %vm92_vm0, %v63_v13 }
  0xe9   :  { %v506_v16 = vmax.f32 %v339_v15, 0.0  ;;  %1069 = vmatmul.msk.f32.gmra.mxu0 %vm92_vm0, %v48_v14 }
  0xeb   :  { %1117 = vmatmul.msk.f32.gmra.mxu1 %vm570_vm1, %v506_v16 }
  0xee   :  { %v341_v18 = vpop.f32.mrf.mxu0 }
  0xef   :  { %v342_v20 = vadd.f32 %v1316_v28, %v341_v18 }
  0xf1   :  { %v507_v21 = vmax.f32 %v342_v20, 0.0  ;;  %1070 = vmatmul.msk.f32.gmra.mxu0 %vm92_vm0, %v49_v19  ;;  %v64_v19 = vld [vmem:[%s1964_s0 + $0x160] sm:$0xff] }
  0xf2   :  { %1085 = vmatmul.msk.f32.gmra.mxu3 %vm92_vm0, %v64_v19 }
  0xf3   :  { %1118 = vmatmul.msk.f32.gmra.mxu1 %vm570_vm1, %v507_v21 }
  0xf6   :  { %v344_v23 = vpop.f32.mrf.mxu0 }
  0xf7   :  { %v345_v25 = vadd.f32 %v1316_v28, %v344_v23 }
  0xf9   :  { %v508_v26 = vmax.f32 %v345_v25, 0.0  ;;  %1071 = vmatmul.msk.f32.gmra.mxu0 %vm92_vm0, %v50_v24  ;;  %v65_v25 = vld [vmem:[%s1964_s0 + $0x168] sm:$0xff] }
  0xfa   :  { %1086 = vmatmul.msk.f32.gmra.mxu3 %vm92_vm0, %v65_v25 }
  0xfb   :  { %1119 = vmatmul.msk.f32.gmra.mxu1 %vm570_vm1, %v508_v26 }
  0xfe   :  { %v347_v29 = vpop.f32.mrf.mxu0 }
  0xff   :  { %v348_v31 = vadd.f32 %v1316_v28, %v347_v29 }
 0x101   :  { %v509_v32 = vmax.f32 %v348_v31, 0.0  ;;  %1072 = vmatmul.msk.f32.gmra.mxu0 %vm92_vm0, %v51_v30 }
 0x103   :  { %1120 = vmatmul.msk.f32.gmra.mxu1 %vm570_vm1, %v509_v32  ;;  %v66_v32 = vld [vmem:[%s1964_s0 + $0x170] sm:$0xff] }
 0x104   :  { %1087 = vmatmul.msk.f32.gmra.mxu3 %vm92_vm0, %v66_v32 }
 0x106   :  { %v350_v35 = vpop.f32.mrf.mxu0 }
 0x107   :  { %v351_v37 = vadd.f32 %v1316_v28, %v350_v35 }
 0x108   :  { %v780_v38 = vpop.f32.mrf.mxu1 }
 0x109   :  { %v510_v39 = vmax.f32 %v351_v37, 0.0  ;;  %v781_v40 = vadd.f32 %v1433_v34, %v780_v38  ;;  %1073 = vmatmul.msk.f32.gmra.mxu0 %vm92_vm0, %v52_v36 }
 0x10b   :  { %973 = vst.msk [vmem:[%s1968_s5] sm:$0xff] %vm972_vm2, %v781_v40  ;;  %1121 = vmatmul.msk.f32.gmra.mxu1 %vm570_vm1, %v510_v39  ;;  %v67_v39 = vld [vmem:[%s1964_s0 + $0x178] sm:$0xff] }
 0x10c   :  { %1088 = vmatmul.msk.f32.gmra.mxu3 %vm92_vm0, %v67_v39 }
 0x10e   :  { %v353_v42 = vpop.f32.mrf.mxu0 }
 0x10f   :  { %v354_v43 = vadd.f32 %v1316_v28, %v353_v42 }
 0x110   :  { %v783_v44 = vpop.f32.mrf.mxu1 }
 0x111   :  { %v511_v45 = vmax.f32 %v354_v43, 0.0  ;;  %v784_v46 = vadd.f32 %v1433_v34, %v783_v44 }
 0x113   :  { %974 = vst.msk [vmem:[%s1968_s5 + $0x8] sm:$0xff] %vm972_vm2, %v784_v46  ;;  %1122 = vmatmul.msk.f32.gmra.mxu1 %vm570_vm1, %v511_v45  ;;  %v68_v45 = vld [vmem:[%s1964_s0 + $0x180] sm:$0xff] }
 0x114   :  { %1089 = vmatmul.msk.f32.gmra.mxu3 %vm92_vm0, %v68_v45 }
 0x116   :  { %v356_v48 = vpop.f32.mrf.mxu0 }
 0x117   :  { %v357_v49 = vadd.f32 %v1316_v28, %v356_v48 }
 0x118   :  { %v786_v50 = vpop.f32.mrf.mxu1 }
 0x119   :  { %v512_v51 = vmax.f32 %v357_v49, 0.0  ;;  %v787_v52 = vadd.f32 %v1433_v34, %v786_v50 }
 0x11b   :  { %975 = vst.msk [vmem:[%s1968_s5 + $0x10] sm:$0xff] %vm972_vm2, %v787_v52  ;;  %1123 = vmatmul.msk.f32.gmra.mxu1 %vm570_vm1, %v512_v51  ;;  %v69_v51 = vld [vmem:[%s1964_s0 + $0x188] sm:$0xff] }
 0x11c   :  { %1090 = vmatmul.msk.f32.gmra.mxu3 %vm92_vm0, %v69_v51 }
 0x11e   :  { %v359_v54 = vpop.f32.mrf.mxu0 }
 0x11f   :  { %v360_v55 = vadd.f32 %v1316_v28, %v359_v54 }
 0x120   :  { %v789_v56 = vpop.f32.mrf.mxu1 }
 0x121   :  { %v513_v57 = vmax.f32 %v360_v55, 0.0  ;;  %v790_v58 = vadd.f32 %v1433_v34, %v789_v56 }
 0x123   :  { %976 = vst.msk [vmem:[%s1968_s5 + $0x18] sm:$0xff] %vm972_vm2, %v790_v58  ;;  %1124 = vmatmul.msk.f32.gmra.mxu1 %vm570_vm1, %v513_v57  ;;  %v70_v58 = vld [vmem:[%s1964_s0 + $0x190] sm:$0xff] }
 0x124   :  { %1091 = vmatmul.msk.f32.gmra.mxu3 %vm92_vm0, %v70_v58 }
 0x126   :  { %v362_v60 = vpop.f32.mrf.mxu0 }
 0x127   :  { %v363_v61 = vadd.f32 %v1316_v28, %v362_v60  ;;  %v404_v60 = vpop.f32.mrf.mxu3 }
 0x128   :  { %v792_v62 = vpop.f32.mrf.mxu1 }
 0x129   :  { %v514_v63 = vmax.f32 %v363_v61, 0.0  ;;  %v793_v0 = vadd.f32 %v1433_v34, %v792_v62 }
 0x12b   :  { %977 = vst.msk [vmem:[%s1968_s5 + $0x20] sm:$0xff] %vm972_vm2, %v793_v0  ;;  %1125 = vmatmul.msk.f32.gmra.mxu1 %vm570_vm1, %v514_v63 }
 0x12c   :  { %1092 = vmatmul.msk.f32.gmra.mxu3 %vm92_vm0, %v71_v1  ;;  %v81_v1 = vld [vmem:[%s1964_s0 + $0x1e8] sm:$0xff] }
 0x12e   :  { %v365_v2 = vpop.f32.mrf.mxu0 }
 0x12f   :  { %v366_v3 = vadd.f32 %v1316_v28, %v365_v2 }
 0x130   :  { %v795_v4 = vpop.f32.mrf.mxu1 }
 0x131   :  { %v515_v5 = vmax.f32 %v366_v3, 0.0  ;;  %v796_v6 = vadd.f32 %v1433_v34, %v795_v4  ;;  %v407_v3 = vpop.f32.mrf.mxu3 }
 0x133   :  { %978 = vst.msk [vmem:[%s1968_s5 + $0x28] sm:$0xff] %vm972_vm2, %v796_v6  ;;  %1126 = vmatmul.msk.f32.gmra.mxu1 %vm570_vm1, %v515_v5 }
 0x136   :  { %v368_v8 = vpop.f32.mrf.mxu0 }
 0x137   :  { %v369_v9 = vadd.f32 %v1316_v28, %v368_v8  ;;  %v72_v8 = vld [vmem:[%s1964_s0 + $0x1a0] sm:$0xff] }
 0x138   :  { %v798_v10 = vpop.f32.mrf.mxu1  ;;  %1093 = vmatmul.msk.f32.gmra.mxu3 %vm92_vm0, %v72_v8 }
 0x139   :  { %v516_v11 = vmax.f32 %v369_v9, 0.0  ;;  %v799_v12 = vadd.f32 %v1433_v34, %v798_v10  ;;  %v410_v10 = vpop.f32.mrf.mxu3 }
 0x13b   :  { %979 = vst.msk [vmem:[%s1968_s5 + $0x30] sm:$0xff] %vm972_vm2, %v799_v12  ;;  %1127 = vmatmul.msk.f32.gmra.mxu1 %vm570_vm1, %v516_v11 }
 0x13e   :  { %v371_v14 = vpop.f32.mrf.mxu0 }
 0x13f   :  { %v372_v15 = vadd.f32 %v1316_v28, %v371_v14 }
 0x140   :  { %v801_v16 = vpop.f32.mrf.mxu1 }
 0x141   :  { %v517_v17 = vmax.f32 %v372_v15, 0.0  ;;  %v802_v18 = vadd.f32 %v1433_v34, %v801_v16  ;;  %v73_v15 = vld [vmem:[%s1964_s0 + $0x1a8] sm:$0xff]  ;;  %v402_v16 = vadd.f32 %v1316_v28, %v401_v53  ;;  %v79_v53 = vld [vmem:[%s1964_s0 + $0x1d8] sm:$0xff] }
 0x142   :  { %1094 = vmatmul.msk.f32.gmra.mxu3 %vm92_vm0, %v73_v15 }
 0x143   :  { %980 = vst.msk [vmem:[%s1968_s5 + $0x38] sm:$0xff] %vm972_vm2, %v802_v18  ;;  %1128 = vmatmul.msk.f32.gmra.mxu1 %vm570_vm1, %v517_v17  ;;  %v413_v17 = vpop.f32.mrf.mxu3  ;;  %v527_v18 = vmax.f32 %v402_v16, 0.0 }
 0x146   :  { %v374_v20 = vpop.f32.mrf.mxu0 }
 0x147   :  { %v375_v21 = vadd.f32 %v1316_v28, %v374_v20 }
 0x148   :  { %v804_v22 = vpop.f32.mrf.mxu1 }
 0x149   :  { %v518_v23 = vmax.f32 %v375_v21, 0.0  ;;  %v805_v24 = vadd.f32 %v1433_v34, %v804_v22  ;;  %v74_v21 = vld [vmem:[%s1964_s0 + $0x1b0] sm:$0xff]  ;;  %v405_v22 = vadd.f32 %v1316_v28, %v404_v60 }
 0x14a   :  { %1095 = vmatmul.msk.f32.gmra.mxu3 %vm92_vm0, %v74_v21 }
 0x14b   :  { %981 = vst.msk [vmem:[%s1968_s5 + $0x40] sm:$0xff] %vm972_vm2, %v805_v24  ;;  %1129 = vmatmul.msk.f32.gmra.mxu1 %vm570_vm1, %v518_v23  ;;  %v416_v23 = vpop.f32.mrf.mxu3  ;;  %v528_v24 = vmax.f32 %v405_v22, 0.0 }
 0x14e   :  { %v377_v26 = vpop.f32.mrf.mxu0 }
 0x14f   :  { %v378_v27 = vadd.f32 %v1316_v28, %v377_v26 }
 0x150   :  { %v807_v29 = vpop.f32.mrf.mxu1 }
 0x151   :  { %v519_v30 = vmax.f32 %v378_v27, 0.0  ;;  %v808_v31 = vadd.f32 %v1433_v34, %v807_v29  ;;  %v75_v27 = vld [vmem:[%s1964_s0 + $0x1b8] sm:$0xff]  ;;  %v408_v29 = vadd.f32 %v1316_v28, %v407_v3 }
 0x152   :  { %1096 = vmatmul.msk.f32.gmra.mxu3 %vm92_vm0, %v75_v27 }
 0x153   :  { %982 = vst.msk [vmem:[%s1968_s5 + $0x48] sm:$0xff] %vm972_vm2, %v808_v31  ;;  %1130 = vmatmul.msk.f32.gmra.mxu1 %vm570_vm1, %v519_v30  ;;  %v419_v30 = vpop.f32.mrf.mxu3  ;;  %v529_v31 = vmax.f32 %v408_v29, 0.0 }
 0x156   :  { %v380_v33 = vpop.f32.mrf.mxu0 }
 0x157   :  { %v381_v35 = vadd.f32 %v1316_v28, %v380_v33 }
 0x158   :  { %v810_v36 = vpop.f32.mrf.mxu1 }
 0x159   :  { %v520_v37 = vmax.f32 %v381_v35, 0.0  ;;  %v811_v38 = vadd.f32 %v1433_v34, %v810_v36  ;;  %v76_v35 = vld [vmem:[%s1964_s0 + $0x1c0] sm:$0xff]  ;;  %v411_v36 = vadd.f32 %v1316_v28, %v410_v10 }
 0x15a   :  { %1097 = vmatmul.msk.f32.gmra.mxu3 %vm92_vm0, %v76_v35 }
 0x15b   :  { %983 = vst.msk [vmem:[%s1968_s5 + $0x50] sm:$0xff] %vm972_vm2, %v811_v38  ;;  %1131 = vmatmul.msk.f32.gmra.mxu1 %vm570_vm1, %v520_v37  ;;  %v422_v37 = vpop.f32.mrf.mxu3  ;;  %v530_v38 = vmax.f32 %v411_v36, 0.0 }
 0x15c   :  { %v423_v60 = vadd.f32 %v1316_v28, %v422_v37 }
 0x15e   :  { %v383_v40 = vpop.f32.mrf.mxu0 }
 0x15f   :  { %v384_v41 = vadd.f32 %v1316_v28, %v383_v40 }
 0x160   :  { %v813_v42 = vpop.f32.mrf.mxu1 }
 0x161   :  { %v521_v43 = vmax.f32 %v384_v41, 0.0  ;;  %v814_v44 = vadd.f32 %v1433_v34, %v813_v42  ;;  %v77_v41 = vld [vmem:[%s1964_s0 + $0x1c8] sm:$0xff]  ;;  %v414_v42 = vadd.f32 %v1316_v28, %v413_v17 }
 0x162   :  { %1098 = vmatmul.msk.f32.gmra.mxu3 %vm92_vm0, %v77_v41 }
 0x163   :  { %984 = vst.msk [vmem:[%s1968_s5 + $0x58] sm:$0xff] %vm972_vm2, %v814_v44  ;;  %1132 = vmatmul.msk.f32.gmra.mxu1 %vm570_vm1, %v521_v43  ;;  %v425_v43 = vpop.f32.mrf.mxu3  ;;  %v531_v44 = vmax.f32 %v414_v42, 0.0 }
 0x166   :  { %v386_v46 = vpop.f32.mrf.mxu0 }
 0x167   :  { %v387_v47 = vadd.f32 %v1316_v28, %v386_v46 }
 0x168   :  { %v816_v48 = vpop.f32.mrf.mxu1 }
 0x169   :  { %v522_v49 = vmax.f32 %v387_v47, 0.0  ;;  %v817_v50 = vadd.f32 %v1433_v34, %v816_v48  ;;  %v78_v47 = vld [vmem:[%s1964_s0 + $0x1d0] sm:$0xff]  ;;  %v417_v48 = vadd.f32 %v1316_v28, %v416_v23 }
 0x16a   :  { %1099 = vmatmul.msk.f32.gmra.mxu3 %vm92_vm0, %v78_v47 }
 0x16b   :  { %985 = vst.msk [vmem:[%s1968_s5 + $0x60] sm:$0xff] %vm972_vm2, %v817_v50  ;;  %1133 = vmatmul.msk.f32.gmra.mxu1 %vm570_vm1, %v522_v49  ;;  %v428_v49 = vpop.f32.mrf.mxu3  ;;  %v532_v50 = vmax.f32 %v417_v48, 0.0 }
 0x16c   :  { %v429_v8 = vadd.f32 %v1316_v28, %v428_v49 }
 0x16e   :  { %v389_v52 = vpop.f32.mrf.mxu0  ;;  %v536_v10 = vmax.f32 %v429_v8, 0.0 }
 0x16f   :  { %v390_v54 = vadd.f32 %v1316_v28, %v389_v52 }
 0x170   :  { %v819_v55 = vpop.f32.mrf.mxu1 }
 0x171   :  { %v523_v56 = vmax.f32 %v390_v54, 0.0  ;;  %v820_v57 = vadd.f32 %v1433_v34, %v819_v55  ;;  %v420_v54 = vadd.f32 %v1316_v28, %v419_v30 }
 0x172   :  { %1100 = vmatmul.msk.f32.gmra.mxu3 %vm92_vm0, %v79_v53 }
 0x173   :  { %986 = vst.msk [vmem:[%s1968_s5 + $0x68] sm:$0xff] %vm972_vm2, %v820_v57  ;;  %1134 = vmatmul.msk.f32.gmra.mxu1 %vm570_vm1, %v523_v56  ;;  %v431_v55 = vpop.f32.mrf.mxu3  ;;  %v533_v56 = vmax.f32 %v420_v54, 0.0 }
 0x176   :  { %v392_v59 = vpop.f32.mrf.mxu0 }
 0x177   :  { %v393_v61 = vadd.f32 %v1316_v28, %v392_v59  ;;  %v80_v59 = vld [vmem:[%s1964_s0 + $0x1e0] sm:$0xff] }
 0x178   :  { %v822_v62 = vpop.f32.mrf.mxu1 }
 0x179   :  { %v524_v63 = vmax.f32 %v393_v61, 0.0  ;;  %v823_v0 = vadd.f32 %v1433_v34, %v822_v62  ;;  %v534_v62 = vmax.f32 %v423_v60, 0.0 }
 0x17a   :  { %1101 = vmatmul.msk.f32.gmra.mxu3 %vm92_vm0, %v80_v59 }
 0x17b   :  { %987 = vst.msk [vmem:[%s1968_s5 + $0x70] sm:$0xff] %vm972_vm2, %v823_v0  ;;  %1135 = vmatmul.msk.f32.gmra.mxu1 %vm570_vm1, %v524_v63  ;;  %v434_v61 = vpop.f32.mrf.mxu3 }
 0x17e   :  { %v395_v2 = vpop.f32.mrf.mxu0 }
 0x17f   :  { %v396_v4 = vadd.f32 %v1316_v28, %v395_v2  ;;  %v426_v2 = vadd.f32 %v1316_v28, %v425_v43 }
 0x180   :  { %v825_v5 = vpop.f32.mrf.mxu1 }
 0x181   :  { %v525_v6 = vmax.f32 %v396_v4, 0.0  ;;  %v826_v7 = vadd.f32 %v1433_v34, %v825_v5  ;;  %v535_v4 = vmax.f32 %v426_v2, 0.0 }
 0x182   :  { %1102 = vmatmul.msk.f32.gmra.mxu3 %vm92_vm0, %v81_v1 }
 0x183   :  { %988 = vst.msk [vmem:[%s1968_s5 + $0x78] sm:$0xff] %vm972_vm2, %v826_v7  ;;  %1136 = vmatmul.msk.f32.gmra.mxu1 %vm570_vm1, %v525_v6  ;;  %v437_v3 = vpop.f32.mrf.mxu3  ;;  %v82_v7 = vld [vmem:[%s1964_s0 + $0x1f0] sm:$0xff] }
 0x186   :  { %v398_v9 = vpop.f32.mrf.mxu0 }
 0x187   :  { %v399_v11 = vadd.f32 %v1316_v28, %v398_v9 }
 0x188   :  { %v828_v12 = vpop.f32.mrf.mxu1 }
 0x189   :  { %v526_v13 = vmax.f32 %v399_v11, 0.0  ;;  %v829_v14 = vadd.f32 %v1433_v34, %v828_v12 }
 0x18a   :  { %1103 = vmatmul.msk.f32.gmra.mxu3 %vm92_vm0, %v82_v7 }
 0x18b   :  { %989 = vst.msk [vmem:[%s1968_s5 + $0x80] sm:$0xff] %vm972_vm2, %v829_v14  ;;  %1137 = vmatmul.msk.f32.vlgmr.msra.gmra.mxu2 %vm570_vm1, %v526_v13  ;;  %v440_v9 = vpop.f32.mrf.mxu3  ;;  %v83_v13 = vld [vmem:[%s1964_s0 + $0x1f8] sm:$0xff]  ;;  %v432_v14 = vadd.f32 %v1316_v28, %v431_v55 }
 0x18c   :  { %v441_v30 = vadd.f32 %v1316_v28, %v440_v9 }
 0x18d   :  { %v537_v16 = vmax.f32 %v432_v14, 0.0 }
 0x190   :  { %v831_v19 = vpop.f32.mrf.mxu1 }
 0x191   :  { %v832_v20 = vadd.f32 %v1433_v34, %v831_v19  ;;  %v435_v19 = vadd.f32 %v1316_v28, %v434_v61 }
 0x192   :  { %1104 = vmatmul.msk.f32.gmra.mxu3 %vm92_vm0, %v83_v13 }
 0x193   :  { %990 = vst.msk [vmem:[%s1968_s5 + $0x88] sm:$0xff] %vm972_vm2, %v832_v20  ;;  %1138 = vmatmul.msk.f32.gmra.mxu2 %vm570_vm1, %v527_v18  ;;  %v443_v15 = vpop.f32.mrf.mxu3  ;;  %v538_v21 = vmax.f32 %v435_v19, 0.0 }
 0x194   :  { %v444_v36 = vadd.f32 %v1316_v28, %v443_v15 }
 0x196   :  { %v541_v37 = vmax.f32 %v444_v36, 0.0 }
 0x198   :  { %v834_v25 = vpop.f32.mrf.mxu1 }
 0x199   :  { %v835_v26 = vadd.f32 %v1433_v34, %v834_v25 }
 0x19b   :  { %991 = vst.msk [vmem:[%s1968_s5 + $0x90] sm:$0xff] %vm972_vm2, %v835_v26  ;;  %1139 = vmatmul.msk.f32.gmra.mxu2 %vm570_vm1, %v528_v24  ;;  %v446_v20 = vpop.f32.mrf.mxu3  ;;  %v438_v24 = vadd.f32 %v1316_v28, %v437_v3 }
 0x19c   :  { %v447_v41 = vadd.f32 %v1316_v28, %v446_v20 }
 0x19d   :  { %v539_v26 = vmax.f32 %v438_v24, 0.0 }
 0x19e   :  { %v542_v42 = vmax.f32 %v447_v41, 0.0 }
 0x1a0   :  { %v837_v32 = vpop.f32.mrf.mxu1 }
 0x1a1   :  { %v838_v33 = vadd.f32 %v1433_v34, %v837_v32  ;;  %v540_v32 = vmax.f32 %v441_v30, 0.0 }
 0x1a3   :  { %992 = vst.msk [vmem:[%s1968_s5 + $0x98] sm:$0xff] %vm972_vm2, %v838_v33  ;;  %1140 = vmatmul.msk.f32.gmra.mxu2 %vm570_vm1, %v529_v31  ;;  %v449_v25 = vpop.f32.mrf.mxu3 }
 0x1a8   :  { %v840_v39 = vpop.f32.mrf.mxu1 }
 0x1a9   :  { %v841_v40 = vadd.f32 %v1433_v34, %v840_v39 }
 0x1ab   :  { %993 = vst.msk [vmem:[%s1968_s5 + $0xa0] sm:$0xff] %vm972_vm2, %v841_v40  ;;  %1141 = vmatmul.msk.f32.gmra.mxu2 %vm570_vm1, %v530_v38  ;;  %v452_v31 = vpop.f32.mrf.mxu3 }
 0x1ac   :  { %v453_v48 = vadd.f32 %v1316_v28, %v452_v31 }
 0x1b0   :  { %v843_v45 = vpop.f32.mrf.mxu1 }
 0x1b1   :  { %v844_v46 = vadd.f32 %v1433_v34, %v843_v45 }
 0x1b3   :  { %994 = vst.msk [vmem:[%s1968_s5 + $0xa8] sm:$0xff] %vm972_vm2, %v844_v46  ;;  %1142 = vmatmul.msk.f32.gmra.mxu2 %vm570_vm1, %v531_v44  ;;  %v455_v39 = vpop.f32.mrf.mxu3  ;;  %v450_v44 = vadd.f32 %v1316_v28, %v449_v25 }
 0x1b4   :  { %v456_v53 = vadd.f32 %v1316_v28, %v455_v39 }
 0x1b5   :  { %v543_v46 = vmax.f32 %v450_v44, 0.0 }
 0x1b8   :  { %v846_v51 = vpop.f32.mrf.mxu1 }
 0x1b9   :  { %v847_v52 = vadd.f32 %v1433_v34, %v846_v51  ;;  %v544_v51 = vmax.f32 %v453_v48, 0.0 }
 0x1bb   :  { %995 = vst.msk [vmem:[%s1968_s5 + $0xb0] sm:$0xff] %vm972_vm2, %v847_v52  ;;  %1143 = vmatmul.msk.f32.gmra.mxu2 %vm570_vm1, %v532_v50  ;;  %v458_v43 = vpop.f32.mrf.mxu3 }
 0x1c0   :  { %v849_v57 = vpop.f32.mrf.mxu1 }
 0x1c1   :  { %v850_v58 = vadd.f32 %v1433_v34, %v849_v57 }
 0x1c3   :  { %996 = vst.msk [vmem:[%s1968_s5 + $0xb8] sm:$0xff] %vm972_vm2, %v850_v58  ;;  %1144 = vmatmul.msk.f32.gmra.mxu2 %vm570_vm1, %v533_v56  ;;  %v545_v56 = vmax.f32 %v456_v53, 0.0  ;;  %v459_v58 = vadd.f32 %v1316_v28, %v458_v43 }
 0x1c5   :  { %v461_v49 = vpop.f32.mrf.mxu3  ;;  %v546_v60 = vmax.f32 %v459_v58, 0.0 }
 0x1c8   :  { %v852_v63 = vpop.f32.mrf.mxu1 }
 0x1c9   :  { %v853_v0 = vadd.f32 %v1433_v34, %v852_v63  ;;  %v462_v63 = vadd.f32 %v1316_v28, %v461_v49 }
 0x1cb   :  { %997 = vst.msk [vmem:[%s1968_s5 + $0xc0] sm:$0xff] %vm972_vm2, %v853_v0  ;;  %1145 = vmatmul.msk.f32.gmra.mxu2 %vm570_vm1, %v534_v62  ;;  %v547_v1 = vmax.f32 %v462_v63, 0.0 }
 0x1cd   :  { %v464_v55 = vpop.f32.mrf.mxu3 }
 0x1d0   :  { %v855_v5 = vpop.f32.mrf.mxu1 }
 0x1d1   :  { %v856_v6 = vadd.f32 %v1433_v34, %v855_v5 }
 0x1d3   :  { %998 = vst.msk [vmem:[%s1968_s5 + $0xc8] sm:$0xff] %vm972_vm2, %v856_v6  ;;  %1146 = vmatmul.msk.f32.gmra.mxu2 %vm570_vm1, %v535_v4  ;;  %v465_v4 = vadd.f32 %v1316_v28, %v464_v55 }
 0x1d5   :  { %v467_v62 = vpop.f32.mrf.mxu3  ;;  %v548_v6 = vmax.f32 %v465_v4, 0.0 }
 0x1d6   :  { %v468_v8 = vadd.f32 %v1316_v28, %v467_v62 }
 0x1d8   :  { %v858_v11 = vpop.f32.mrf.mxu1 }
 0x1d9   :  { %v859_v12 = vadd.f32 %v1433_v34, %v858_v11  ;;  %v549_v11 = vmax.f32 %v468_v8, 0.0 }
 0x1db   :  { %999 = vst.msk [vmem:[%s1968_s5 + $0xd0] sm:$0xff] %vm972_vm2, %v859_v12  ;;  %1147 = vmatmul.msk.f32.gmra.mxu2 %vm570_vm1, %v536_v10 }
 0x1dd   :  { %v470_v3 = vpop.f32.mrf.mxu3 }
 0x1de   :  { %v471_v13 = vadd.f32 %v1316_v28, %v470_v3 }
 0x1e0   :  { %v861_v17 = vpop.f32.mrf.mxu1 }
 0x1e1   :  { %v862_v18 = vadd.f32 %v1433_v34, %v861_v17 }
 0x1e3   :  { %1000 = vst.msk [vmem:[%s1968_s5 + $0xd8] sm:$0xff] %vm972_vm2, %v862_v18  ;;  %1148 = vmatmul.msk.f32.gmra.mxu2 %vm570_vm1, %v537_v16  ;;  %v550_v16 = vmax.f32 %v471_v13, 0.0 }
 0x1e5   :  { %v473_v9 = vpop.f32.mrf.mxu3 }
 0x1e6   :  { %v474_v18 = vadd.f32 %v1316_v28, %v473_v9 }
 0x1e8   :  { %v864_v22 = vpop.f32.mrf.mxu1  ;;  %v551_v20 = vmax.f32 %v474_v18, 0.0 }
 0x1e9   :  { %v865_v23 = vadd.f32 %v1433_v34, %v864_v22 }
 0x1eb   :  { %1001 = vst.msk [vmem:[%s1968_s5 + $0xe0] sm:$0xff] %vm972_vm2, %v865_v23  ;;  %1149 = vmatmul.msk.f32.gmra.mxu2 %vm570_vm1, %v538_v21 }
 0x1ed   :  { %v476_v15 = vpop.f32.mrf.mxu3 }
 0x1ee   :  { %v477_v23 = vadd.f32 %v1316_v28, %v476_v15 }
 0x1f0   :  { %v867_v27 = vpop.f32.mrf.mxu1  ;;  %v552_v25 = vmax.f32 %v477_v23, 0.0 }
 0x1f1   :  { %v868_v29 = vadd.f32 %v1433_v34, %v867_v27 }
 0x1f3   :  { %1002 = vst.msk [vmem:[%s1968_s5 + $0xe8] sm:$0xff] %vm972_vm2, %v868_v29  ;;  %1150 = vmatmul.msk.f32.gmra.mxu2 %vm570_vm1, %v539_v26 }
 0x1f5   :  { %v479_v22 = vpop.f32.mrf.mxu3 }
 0x1f6   :  { %v480_v29 = vadd.f32 %v1316_v28, %v479_v22 }
 0x1f8   :  { %v870_v33 = vpop.f32.mrf.mxu1  ;;  %v553_v31 = vmax.f32 %v480_v29, 0.0 }
 0x1f9   :  { %v871_v35 = vadd.f32 %v1433_v34, %v870_v33 }
 0x1fb   :  { %1003 = vst.msk [vmem:[%s1968_s5 + $0xf0] sm:$0xff] %vm972_vm2, %v871_v35  ;;  %1151 = vmatmul.msk.f32.gmra.mxu2 %vm570_vm1, %v540_v32 }
 0x1fd   :  { %v482_v27 = vpop.f32.mrf.mxu3 }
 0x1fe   :  { %v483_v33 = vadd.f32 %v1316_v28, %v482_v27 }
 0x200   :  { %v873_v38 = vpop.f32.mrf.mxu1 }
 0x201   :  { %v874_v40 = vadd.f32 %v1433_v34, %v873_v38 }
 0x203   :  { %1004 = vst.msk [vmem:[%s1968_s5 + $0xf8] sm:$0xff] %vm972_vm2, %v874_v40  ;;  %1152 = vmatmul.msk.f32.gmra.mxu2 %vm570_vm1, %v541_v37  ;;  %v554_v37 = vmax.f32 %v483_v33, 0.0 }
 0x205   :  { %v485_v35 = vpop.f32.mrf.mxu3 }
 0x206   :  { %v486_v39 = vadd.f32 %v1316_v28, %v485_v35 }
 0x20b   :  { %1153 = vmatmul.msk.f32.gmra.mxu2 %vm570_vm1, %v542_v42  ;;  %v555_v42 = vmax.f32 %v486_v39, 0.0 }
 0x20d   :  { %v488_v41 = vpop.f32.mrf.mxu3 }
 0x20e   :  { %v876_v45 = vpop.f32.mrf.mxu2  ;;  %v489_v44 = vadd.f32 %v1316_v28, %v488_v41 }
 0x20f   :  { %v877_v47 = vadd.f32 %v1433_v34, %v876_v45 }
 0x211   :  { %1005 = vst.msk [vmem:[%s1968_s5 + $0x100] sm:$0xff] %vm972_vm2, %v877_v47 }
 0x213   :  { %1154 = vmatmul.msk.f32.gmra.mxu2 %vm570_vm1, %v543_v46  ;;  %v556_v46 = vmax.f32 %v489_v44, 0.0 }
 0x215   :  { %v491_v48 = vpop.f32.mrf.mxu3 }
 0x216   :  { %v879_v50 = vpop.f32.mrf.mxu2  ;;  %v492_v49 = vadd.f32 %v1316_v28, %v491_v48 }
 0x217   :  { %v880_v52 = vadd.f32 %v1433_v34, %v879_v50 }
 0x219   :  { %1006 = vst.msk [vmem:[%s1968_s5 + $0x108] sm:$0xff] %vm972_vm2, %v880_v52 }
 0x21b   :  { %1155 = vmatmul.msk.f32.gmra.mxu2 %vm570_vm1, %v544_v51  ;;  %v557_v51 = vmax.f32 %v492_v49, 0.0 }
 0x21e   :  { %v882_v54 = vpop.f32.mrf.mxu2 }
 0x21f   :  { %v883_v57 = vadd.f32 %v1433_v34, %v882_v54 }
 0x221   :  { %1007 = vst.msk [vmem:[%s1968_s5 + $0x110] sm:$0xff] %vm972_vm2, %v883_v57 }
 0x223   :  { %1156 = vmatmul.msk.f32.gmra.mxu2 %vm570_vm1, %v545_v56 }
 0x226   :  { %v885_v59 = vpop.f32.mrf.mxu2 }
 0x227   :  { %v886_v61 = vadd.f32 %v1433_v34, %v885_v59 }
 0x229   :  { %1008 = vst.msk [vmem:[%s1968_s5 + $0x118] sm:$0xff] %vm972_vm2, %v886_v61 }
 0x22b   :  { %1157 = vmatmul.msk.f32.gmra.mxu2 %vm570_vm1, %v546_v60 }
 0x22e   :  { %v888_v0 = vpop.f32.mrf.mxu2 }
 0x22f   :  { %v889_v2 = vadd.f32 %v1433_v34, %v888_v0 }
 0x231   :  { %1009 = vst.msk [vmem:[%s1968_s5 + $0x120] sm:$0xff] %vm972_vm2, %v889_v2 }
 0x233   :  { %1158 = vmatmul.msk.f32.gmra.mxu2 %vm570_vm1, %v547_v1 }
 0x236   :  { %v891_v5 = vpop.f32.mrf.mxu2 }
 0x237   :  { %v892_v7 = vadd.f32 %v1433_v34, %v891_v5 }
 0x239   :  { %1010 = vst.msk [vmem:[%s1968_s5 + $0x128] sm:$0xff] %vm972_vm2, %v892_v7 }
 0x23b   :  { %1159 = vmatmul.msk.f32.gmra.mxu2 %vm570_vm1, %v548_v6 }
 0x23e   :  { %v894_v10 = vpop.f32.mrf.mxu2 }
 0x23f   :  { %v895_v12 = vadd.f32 %v1433_v34, %v894_v10 }
 0x241   :  { %1011 = vst.msk [vmem:[%s1968_s5 + $0x130] sm:$0xff] %vm972_vm2, %v895_v12 }
 0x243   :  { %1160 = vmatmul.msk.f32.gmra.mxu2 %vm570_vm1, %v549_v11 }
 0x246   :  { %v897_v14 = vpop.f32.mrf.mxu2 }
 0x247   :  { %v898_v17 = vadd.f32 %v1433_v34, %v897_v14 }
 0x249   :  { %1012 = vst.msk [vmem:[%s1968_s5 + $0x138] sm:$0xff] %vm972_vm2, %v898_v17 }
 0x24b   :  { %1161 = vmatmul.msk.f32.gmra.mxu2 %vm570_vm1, %v550_v16 }
 0x24e   :  { %v900_v19 = vpop.f32.mrf.mxu2 }
 0x24f   :  { %v901_v21 = vadd.f32 %v1433_v34, %v900_v19 }
 0x251   :  { %1013 = vst.msk [vmem:[%s1968_s5 + $0x140] sm:$0xff] %vm972_vm2, %v901_v21 }
 0x253   :  { %1162 = vmatmul.msk.f32.gmra.mxu2 %vm570_vm1, %v551_v20 }
 0x256   :  { %v903_v24 = vpop.f32.mrf.mxu2 }
 0x257   :  { %v904_v26 = vadd.f32 %v1433_v34, %v903_v24 }
 0x259   :  { %1014 = vst.msk [vmem:[%s1968_s5 + $0x148] sm:$0xff] %vm972_vm2, %v904_v26 }
 0x25b   :  { %1163 = vmatmul.msk.f32.gmra.mxu2 %vm570_vm1, %v552_v25 }
 0x25e   :  { %v906_v30 = vpop.f32.mrf.mxu2 }
 0x25f   :  { %v907_v32 = vadd.f32 %v1433_v34, %v906_v30 }
 0x261   :  { %1015 = vst.msk [vmem:[%s1968_s5 + $0x150] sm:$0xff] %vm972_vm2, %v907_v32 }
 0x263   :  { %1164 = vmatmul.msk.f32.gmra.mxu2 %vm570_vm1, %v553_v31 }
 0x266   :  { %v909_v36 = vpop.f32.mrf.mxu2 }
 0x267   :  { %v910_v38 = vadd.f32 %v1433_v34, %v909_v36 }
 0x269   :  { %1016 = vst.msk [vmem:[%s1968_s5 + $0x158] sm:$0xff] %vm972_vm2, %v910_v38 }
 0x26b   :  { %1165 = vmatmul.msk.f32.gmra.mxu2 %vm570_vm1, %v554_v37 }
 0x26e   :  { %v912_v40 = vpop.f32.mrf.mxu2 }
 0x26f   :  { %v913_v43 = vadd.f32 %v1433_v34, %v912_v40 }
 0x271   :  { %1017 = vst.msk [vmem:[%s1968_s5 + $0x160] sm:$0xff] %vm972_vm2, %v913_v43 }
 0x273   :  { %1166 = vmatmul.msk.f32.gmra.mxu2 %vm570_vm1, %v555_v42 }
 0x276   :  { %v915_v45 = vpop.f32.mrf.mxu2 }
 0x277   :  { %v916_v47 = vadd.f32 %v1433_v34, %v915_v45 }
 0x279   :  { %1018 = vst.msk [vmem:[%s1968_s5 + $0x168] sm:$0xff] %vm972_vm2, %v916_v47 }
 0x27b   :  { %1167 = vmatmul.msk.f32.gmra.mxu2 %vm570_vm1, %v556_v46 }
 0x27e   :  { %v918_v50 = vpop.f32.mrf.mxu2 }
 0x27f   :  { %v919_v52 = vadd.f32 %v1433_v34, %v918_v50 }
 0x281   :  { %1019 = vst.msk [vmem:[%s1968_s5 + $0x170] sm:$0xff] %vm972_vm2, %v919_v52 }
 0x283   :  { %1168 = vmatmul.msk.f32.gmra.mxu2 %vm570_vm1, %v557_v51 }
 0x286   :  { %v921_v53 = vpop.f32.mrf.mxu2 }
 0x287   :  { %v922_v54 = vadd.f32 %v1433_v34, %v921_v53 }
 0x289   :  { %1020 = vst.msk [vmem:[%s1968_s5 + $0x178] sm:$0xff] %vm972_vm2, %v922_v54 }
 0x28e   :  { %v924_v28 = vpop.f32.mrf.mxu2 }
 0x28f   :  { %v925_v55 = vadd.f32 %v1433_v34, %v924_v28 }
 0x291   :  { %1021 = vst.msk [vmem:[%s1968_s5 + $0x180] sm:$0xff] %vm972_vm2, %v925_v55 }
 0x296   :  { %v927_v56 = vpop.f32.mrf.mxu2 }
 0x297   :  { %v928_v57 = vadd.f32 %v1433_v34, %v927_v56 }
 0x299   :  { %1022 = vst.msk [vmem:[%s1968_s5 + $0x188] sm:$0xff] %vm972_vm2, %v928_v57 }
 0x29e   :  { %v930_v58 = vpop.f32.mrf.mxu2 }
 0x29f   :  { %v931_v59 = vadd.f32 %v1433_v34, %v930_v58 }
 0x2a1   :  { %1023 = vst.msk [vmem:[%s1968_s5 + $0x190] sm:$0xff] %vm972_vm2, %v931_v59 }
 0x2a6   :  { %v933_v60 = vpop.f32.mrf.mxu2 }
 0x2a7   :  { %v934_v61 = vadd.f32 %v1433_v34, %v933_v60 }
 0x2a9   :  { %1024 = vst.msk [vmem:[%s1968_s5 + $0x198] sm:$0xff] %vm972_vm2, %v934_v61 }
 0x2ae   :  { %v936_v62 = vpop.f32.mrf.mxu2 }
 0x2af   :  { %v937_v63 = vadd.f32 %v1433_v34, %v936_v62 }
 0x2b1   :  { %1025 = vst.msk [vmem:[%s1968_s5 + $0x1a0] sm:$0xff] %vm972_vm2, %v937_v63 }
 0x2b6   :  { %v939_v0 = vpop.f32.mrf.mxu2 }
 0x2b7   :  { %v940_v1 = vadd.f32 %v1433_v34, %v939_v0 }
 0x2b9   :  { %1026 = vst.msk [vmem:[%s1968_s5 + $0x1a8] sm:$0xff] %vm972_vm2, %v940_v1 }
 0x2be   :  { %v942_v2 = vpop.f32.mrf.mxu2 }
 0x2bf   :  { %v943_v3 = vadd.f32 %v1433_v34, %v942_v2 }
 0x2c1   :  { %1027 = vst.msk [vmem:[%s1968_s5 + $0x1b0] sm:$0xff] %vm972_vm2, %v943_v3 }
 0x2c6   :  { %v945_v4 = vpop.f32.mrf.mxu2 }
 0x2c7   :  { %v946_v5 = vadd.f32 %v1433_v34, %v945_v4 }
 0x2c9   :  { %1028 = vst.msk [vmem:[%s1968_s5 + $0x1b8] sm:$0xff] %vm972_vm2, %v946_v5 }
 0x2ce   :  { %v948_v6 = vpop.f32.mrf.mxu2 }
 0x2cf   :  { %v949_v7 = vadd.f32 %v1433_v34, %v948_v6 }
 0x2d1   :  { %1029 = vst.msk [vmem:[%s1968_s5 + $0x1c0] sm:$0xff] %vm972_vm2, %v949_v7 }
 0x2d6   :  { %v951_v8 = vpop.f32.mrf.mxu2 }
 0x2d7   :  { %v952_v9 = vadd.f32 %v1433_v34, %v951_v8 }
 0x2d9   :  { %1030 = vst.msk [vmem:[%s1968_s5 + $0x1c8] sm:$0xff] %vm972_vm2, %v952_v9 }
 0x2de   :  { %v954_v10 = vpop.f32.mrf.mxu2 }
 0x2df   :  { %v955_v11 = vadd.f32 %v1433_v34, %v954_v10 }
 0x2e1   :  { %1031 = vst.msk [vmem:[%s1968_s5 + $0x1d0] sm:$0xff] %vm972_vm2, %v955_v11 }
 0x2e6   :  { %v957_v12 = vpop.f32.mrf.mxu2 }
 0x2e7   :  { %v958_v13 = vadd.f32 %v1433_v34, %v957_v12 }
 0x2e9   :  { %1032 = vst.msk [vmem:[%s1968_s5 + $0x1d8] sm:$0xff] %vm972_vm2, %v958_v13 }
 0x2ee   :  { %v960_v14 = vpop.f32.mrf.mxu2 }
 0x2ef   :  { %v961_v15 = vadd.f32 %v1433_v34, %v960_v14 }
 0x2f1   :  { %1033 = vst.msk [vmem:[%s1968_s5 + $0x1e0] sm:$0xff] %vm972_vm2, %v961_v15 }
 0x2f6   :  { %v963_v16 = vpop.f32.mrf.mxu2 }
 0x2f7   :  { %v964_v17 = vadd.f32 %v1433_v34, %v963_v16 }
 0x2f9   :  { %1034 = vst.msk [vmem:[%s1968_s5 + $0x1e8] sm:$0xff] %vm972_vm2, %v964_v17 }
 0x2fe   :  { %v966_v18 = vpop.f32.mrf.mxu2 }
 0x2ff   :  { %v967_v19 = vadd.f32 %v1433_v34, %v966_v18 }
 0x301   :  { %1035 = vst.msk [vmem:[%s1968_s5 + $0x1f0] sm:$0xff] %vm972_vm2, %v967_v19 }
 0x306   :  { %v969_v20 = vpop.f32.mrf.mxu2 }
 0x307   :  { %v970_v21 = vadd.f32 %v1433_v34, %v969_v20 }
 0x309   :  { %1036 = vst.msk [vmem:[%s1968_s5 + $0x1f8] sm:$0xff] %vm972_vm2, %v970_v21 }

</bundles_post_ra>
